<compile_context>
chip_gen: v6e
topology: v6e:2x2x1
jax: 0.10.0
libtpu: 0.0.40
codegen_flags: <defaults>
</compile_context>

<pallas_src>
import functools
import math

import jax
import jax.numpy as jnp
from jax.experimental import pallas as pl
from jax.experimental.pallas import tpu as pltpu

_LANE = 128     # vreg lane width (last dim)
_SUBLANE = 8    # vreg sublane width for 32-bit types (second-to-last dim)


def _round_up(n, m):
    return ((n + m - 1) // m) * m


def _pad_to(arr, shape):
    pads = [(0, t - s) for s, t in zip(arr.shape, shape)]
    if all(p == (0, 0) for p in pads):
        return arr
    return jnp.pad(arr, pads)


def _gelu_exact(x):
    # nn.GELU() default in PyTorch is the exact (erf-based) GELU.
    return 0.5 * x * (1.0 + jax.lax.erf(x * (1.0 / math.sqrt(2.0))))


def _mlp_kernel(x_ref, w1_ref, b1_ref, w2_ref, b2_ref, w3_ref, o_ref):
    # One row-tile of the batch: full 3-layer MLP fused in a single invocation.
    # Matmuls accumulate in f32 on the MXU; elementwise GELU runs in f32.
    x = x_ref[...]
    w1 = w1_ref[...]
    h = jnp.dot(x, w1, preferred_element_type=jnp.float32)
    h = _gelu_exact(h + b1_ref[...].astype(jnp.float32))

    w2 = w2_ref[...]
    h = jnp.dot(h.astype(w2.dtype), w2, preferred_element_type=jnp.float32)
    h = _gelu_exact(h + b2_ref[...].astype(jnp.float32))

    w3 = w3_ref[...]
    out = jnp.dot(h.astype(w3.dtype), w3, preferred_element_type=jnp.float32)
    o_ref[...] = out.astype(o_ref.dtype)


def nonlinear_model_forward(x, params, proj_dim, n_comp, *, row_tile=512):
    """Pallas implementation of the decomposition-head forward pass.

    Args:
      x: array of shape (..., input_dim)
      params: dict with w1 (D, H), b1 (H,), w2 (H, H), b2 (H,), w3 (H, P*C)
              where H = 2 * proj_dim * n_comp and P*C = proj_dim * n_comp.
              Weights are stored transposed relative to torch (in, out).
      row_tile: target rows per grid step (sweep 256-1024; 512 is a good
                default for the v6e/v7x 2x256 MXU, any multiple of 128 fills
                the v5e 4x128 MXU).
    Returns:
      array of shape (..., proj_dim, n_comp)
    """
    w1, b1, w2, b2, w3 = (params["w1"], params["b1"], params["w2"],
                          params["b2"], params["w3"])
    in_dim = x.shape[-1]
    hidden = w1.shape[1]
    out_dim = w3.shape[1]
    assert out_dim == proj_dim * n_comp
    lead_shape = x.shape[:-1]

    x2d = x.reshape(-1, in_dim)
    batch = x2d.shape[0]

    # --- Lane-dense feature dims: pad to multiples of 128 (exact; see header).
    d_p = _round_up(in_dim, _LANE)
    h_p = _round_up(hidden, _LANE)
    o_p = _round_up(out_dim, _LANE)

    # --- Row tiling: big tiles for MXU occupancy, clamped to the batch;
    #     pad rows to a multiple of the tile instead of asserting divisibility.
    tm = min(_round_up(max(row_tile, 1), _SUBLANE), _round_up(batch, _SUBLANE))
    b_p = _round_up(batch, tm)
    grid = (b_p // tm,)

    x_p = _pad_to(x2d, (b_p, d_p))
    w1_p = _pad_to(w1, (d_p, h_p))
    w2_p = _pad_to(w2, (h_p, h_p))
    w3_p = _pad_to(w3, (h_p, o_p))
    # Biases kept 2-D (1, H) for TPU-friendly broadcasting inside the kernel.
    b1_p = _pad_to(b1.reshape(1, hidden), (1, h_p))
    b2_p = _pad_to(b2.reshape(1, hidden), (1, h_p))

    # --- Advisory cost estimate for XLA's scheduler.
    x_bytes = jnp.dtype(x.dtype).itemsize
    w_itemsize = jnp.dtype(w1.dtype).itemsize
    w_bytes = (w1_p.size + w2_p.size + w3_p.size
               + b1_p.size + b2_p.size) * w_itemsize
    flops = 2 * b_p * (d_p * h_p + h_p * h_p + h_p * o_p)
    bytes_accessed = x_p.size * x_bytes + w_bytes + b_p * o_p * x_bytes
    cost = pl.CostEstimate(flops=flops,
                           transcendentals=2 * b_p * h_p,
                           bytes_accessed=bytes_accessed)

    # --- Explicit VMEM budget: double-buffered x/out tiles + resident weights.
    x_tile_bytes = tm * d_p * x_bytes
    out_tile_bytes = tm * o_p * x_bytes
    vmem_needed = 2 * (x_tile_bytes + out_tile_bytes) + 2 * w_bytes
    vmem_limit = int(min(max(vmem_needed + (8 << 20), 32 << 20), 64 << 20))

    out_p = pl.pallas_call(
        _mlp_kernel,
        out_shape=jax.ShapeDtypeStruct((b_p, o_p), x.dtype),
        grid_spec=pltpu.PrefetchScalarGridSpec(
            num_scalar_prefetch=0,
            grid=grid,
            in_specs=[
                pl.BlockSpec((tm, d_p), lambda i: (i, 0)),    # x tile
                pl.BlockSpec((d_p, h_p), lambda i: (0, 0)),   # w1 (resident)
                pl.BlockSpec((1, h_p), lambda i: (0, 0)),     # b1 (resident)
                pl.BlockSpec((h_p, h_p), lambda i: (0, 0)),   # w2 (resident)
                pl.BlockSpec((1, h_p), lambda i: (0, 0)),     # b2 (resident)
                pl.BlockSpec((h_p, o_p), lambda i: (0, 0)),   # w3 (resident)
            ],
            out_specs=pl.BlockSpec((tm, o_p), lambda i: (i, 0)),
        ),
        compiler_params=pltpu.CompilerParams(
            dimension_semantics=("parallel",),   # batch tiles shard across TCs
            vmem_limit_bytes=vmem_limit,
        ),
        cost_estimate=cost,
    )(x_p, w1_p, b1_p, w2_p, b2_p, w3_p)

    out2d = out_p[:batch, :out_dim]
    return out2d.reshape(*lead_shape, proj_dim, n_comp)


def init_params(key, input_dim, proj_dim, n_comp, dtype=jnp.float32):
    """Deterministic init mirroring nn.Linear (uniform +/- 1/sqrt(fan_in))."""
    hidden = proj_dim * n_comp * 2
    out_dim = proj_dim * n_comp
    k1, k2, k3, k4, k5 = jax.random.split(key, 5)

    def u(k, shape, fan_in):
        bound = 1.0 / math.sqrt(fan_in)
        return jax.random.uniform(k, shape, dtype, -bound, bound)

    # Stored as (in, out), i.e. the transpose of torch's (out, in) layout.
    return {
        "w1": u(k1, (input_dim, hidden), input_dim),
        "b1": u(k2, (hidden,), input_dim),
        "w2": u(k3, (hidden, hidden), hidden),
        "b2": u(k4, (hidden,), hidden),
        "w3": u(k5, (hidden, out_dim), hidden),
    }


def _reference_forward(x, params, proj_dim, n_comp):
    # Pure-JAX reference for correctness check (exact erf GELU, like nn.GELU()).
    h = jax.nn.gelu(x @ params["w1"] + params["b1"], approximate=False)
    h = jax.nn.gelu(h @ params["w2"] + params["b2"], approximate=False)
    o = h @ params["w3"]
    return o.reshape(*x.shape[:-1], proj_dim, n_comp)


if __name__ == "__main__":
    # Small shapes consistent with the module: x has shape (..., input_dim).
    batch, seq = 2, 8           # leading dims (...,)
    input_dim = 32
    proj_dim, n_comp = 4, 4     # hidden = 32, output features = 16

    key = jax.random.PRNGKey(0)
    kx, kp = jax.random.split(key)
    x = jax.random.normal(kx, (batch, seq, input_dim), dtype=jnp.float32)
    params = init_params(kp, input_dim, proj_dim, n_comp)

    fwd = jax.jit(functools.partial(
        nonlinear_model_forward, proj_dim=proj_dim, n_comp=n_comp))
    out = fwd(x, params)
    jax.block_until_ready(out)

    ref = _reference_forward(x, params, proj_dim, n_comp)
    assert out.shape == (batch, seq, proj_dim, n_comp), out.shape
    assert jnp.allclose(out, ref, atol=1e-5, rtol=1e-5), "mismatch vs reference"

    # Ragged batch (15 rows): exercises the zero-pad + slice path that replaced
    # the old `batch % row_tile == 0` assert.
    x2 = jax.random.normal(jax.random.PRNGKey(1), (3, 5, input_dim),
                           dtype=jnp.float32)
    out2 = fwd(x2, params)
    jax.block_until_ready(out2)
    ref2 = _reference_forward(x2, params, proj_dim, n_comp)
    assert out2.shape == (3, 5, proj_dim, n_comp), out2.shape
    assert jnp.allclose(out2, ref2, atol=1e-5, rtol=1e-5), "mismatch (ragged)"

    print("KERNEL_OK")
</pallas_src>

<mosaic_0001>
module attributes {stable_mosaic.version = 11 : i64} {
  func.func @_mlp_kernel(%arg0: i32, %arg1: memref<16x128xf32, #tpu.memory_space<vmem>>, %arg2: memref<128x128xf32, #tpu.memory_space<vmem>>, %arg3: memref<1x128xf32, #tpu.memory_space<vmem>>, %arg4: memref<128x128xf32, #tpu.memory_space<vmem>>, %arg5: memref<1x128xf32, #tpu.memory_space<vmem>>, %arg6: memref<128x128xf32, #tpu.memory_space<vmem>>, %arg7: memref<16x128xf32, #tpu.memory_space<vmem>>) attributes {dimension_semantics = [#tpu.dimension_semantics<parallel>], iteration_bounds = array<i64: 1>, scalar_prefetch = 0 : i64, scratch_operands = 0 : i64, tpu.core_type = #tpu.core_type<tc>, window_params = [{transform_indices = @transform_0, window_bounds = array<i64: 16, 128>}, {pipeline_mode = #tpu.pipeline_mode<synchronous>, transform_indices = @transform_1, window_bounds = array<i64: 128, 128>}, {pipeline_mode = #tpu.pipeline_mode<synchronous>, transform_indices = @transform_2, window_bounds = array<i64: 1, 128>}, {pipeline_mode = #tpu.pipeline_mode<synchronous>, transform_indices = @transform_3, window_bounds = array<i64: 128, 128>}, {pipeline_mode = #tpu.pipeline_mode<synchronous>, transform_indices = @transform_4, window_bounds = array<i64: 1, 128>}, {pipeline_mode = #tpu.pipeline_mode<synchronous>, transform_indices = @transform_5, window_bounds = array<i64: 128, 128>}, {transform_indices = @transform_6, window_bounds = array<i64: 16, 128>}]} {
    %c0 = arith.constant 0 : index
    %c0_0 = arith.constant 0 : index
    %0 = vector.load %arg1[%c0, %c0_0] : memref<16x128xf32, #tpu.memory_space<vmem>>, vector<16x128xf32>
    %c0_1 = arith.constant 0 : index
    %c0_2 = arith.constant 0 : index
    %1 = vector.load %arg2[%c0_1, %c0_2] : memref<128x128xf32, #tpu.memory_space<vmem>>, vector<128x128xf32>
    %cst = arith.constant dense<0.000000e+00> : vector<16x128xf32>
    %2 = tpu.matmul %0, %1, %cst {dimension_numbers = #tpu.dot_dimension_numbers<[1], [0], [0], [1], [0, 0, 1, 1], [], []>} : vector<16x128xf32>, vector<128x128xf32>, vector<16x128xf32> -> vector<16x128xf32>
    %c0_3 = arith.constant 0 : index
    %c0_4 = arith.constant 0 : index
    %3 = vector.load %arg3[%c0_3, %c0_4] : memref<1x128xf32, #tpu.memory_space<vmem>>, vector<1x128xf32>
    %4 = vector.broadcast %3 : vector<1x128xf32> to vector<16x128xf32>
    %5 = arith.addf %2, %4 : vector<16x128xf32>
    %cst_5 = arith.constant 5.000000e-01 : f32
    %6 = vector.broadcast %cst_5 : f32 to vector<16x128xf32>
    %7 = arith.mulf %6, %5 : vector<16x128xf32>
    %cst_6 = arith.constant 0.707106769 : f32
    %8 = vector.broadcast %cst_6 : f32 to vector<16x128xf32>
    %9 = arith.mulf %5, %8 : vector<16x128xf32>
    %10 = math.erf %9 : vector<16x128xf32>
    %cst_7 = arith.constant 1.000000e+00 : f32
    %11 = vector.broadcast %cst_7 : f32 to vector<16x128xf32>
    %12 = arith.addf %11, %10 : vector<16x128xf32>
    %13 = arith.mulf %7, %12 : vector<16x128xf32>
    %c0_8 = arith.constant 0 : index
    %c0_9 = arith.constant 0 : index
    %14 = vector.load %arg4[%c0_8, %c0_9] : memref<128x128xf32, #tpu.memory_space<vmem>>, vector<128x128xf32>
    %cst_10 = arith.constant dense<0.000000e+00> : vector<16x128xf32>
    %15 = tpu.matmul %13, %14, %cst_10 {dimension_numbers = #tpu.dot_dimension_numbers<[1], [0], [0], [1], [0, 0, 1, 1], [], []>} : vector<16x128xf32>, vector<128x128xf32>, vector<16x128xf32> -> vector<16x128xf32>
    %c0_11 = arith.constant 0 : index
    %c0_12 = arith.constant 0 : index
    %16 = vector.load %arg5[%c0_11, %c0_12] : memref<1x128xf32, #tpu.memory_space<vmem>>, vector<1x128xf32>
    %17 = vector.broadcast %16 : vector<1x128xf32> to vector<16x128xf32>
    %18 = arith.addf %15, %17 : vector<16x128xf32>
    %cst_13 = arith.constant 5.000000e-01 : f32
    %19 = vector.broadcast %cst_13 : f32 to vector<16x128xf32>
    %20 = arith.mulf %19, %18 : vector<16x128xf32>
    %cst_14 = arith.constant 0.707106769 : f32
    %21 = vector.broadcast %cst_14 : f32 to vector<16x128xf32>
    %22 = arith.mulf %18, %21 : vector<16x128xf32>
    %23 = math.erf %22 : vector<16x128xf32>
    %cst_15 = arith.constant 1.000000e+00 : f32
    %24 = vector.broadcast %cst_15 : f32 to vector<16x128xf32>
    %25 = arith.addf %24, %23 : vector<16x128xf32>
    %26 = arith.mulf %20, %25 : vector<16x128xf32>
    %c0_16 = arith.constant 0 : index
    %c0_17 = arith.constant 0 : index
    %27 = vector.load %arg6[%c0_16, %c0_17] : memref<128x128xf32, #tpu.memory_space<vmem>>, vector<128x128xf32>
    %cst_18 = arith.constant dense<0.000000e+00> : vector<16x128xf32>
    %28 = tpu.matmul %26, %27, %cst_18 {dimension_numbers = #tpu.dot_dimension_numbers<[1], [0], [0], [1], [0, 0, 1, 1], [], []>} : vector<16x128xf32>, vector<128x128xf32>, vector<16x128xf32> -> vector<16x128xf32>
    %c0_19 = arith.constant 0 : index
    %c0_20 = arith.constant 0 : index
    %29 = vector.load %arg7[%c0_19, %c0_20] : memref<16x128xf32, #tpu.memory_space<vmem>>, vector<16x128xf32>
    tpu.vector_store %arg7[%c0_19, %c0_20], %28 {strides = array<i32>} : memref<16x128xf32, #tpu.memory_space<vmem>>, vector<16x128xf32>,
    return
  }
  func.func @transform_0(%arg0: i32) -> (i32, i32) {
    %c0_i32 = arith.constant 0 : i32
    %c0_i32_0 = arith.constant 0 : i32
    return %arg0, %c0_i32 : i32, i32
  }
  func.func @transform_1(%arg0: i32) -> (i32, i32) {
    %c0_i32 = arith.constant 0 : i32
    %c0_i32_0 = arith.constant 0 : i32
    %c0_i32_1 = arith.constant 0 : i32
    return %c0_i32, %c0_i32_0 : i32, i32
  }
  func.func @transform_2(%arg0: i32) -> (i32, i32) {
    %c0_i32 = arith.constant 0 : i32
    %c0_i32_0 = arith.constant 0 : i32
    %c0_i32_1 = arith.constant 0 : i32
    return %c0_i32, %c0_i32_0 : i32, i32
  }
  func.func @transform_3(%arg0: i32) -> (i32, i32) {
    %c0_i32 = arith.constant 0 : i32
    %c0_i32_0 = arith.constant 0 : i32
    %c0_i32_1 = arith.constant 0 : i32
    return %c0_i32, %c0_i32_0 : i32, i32
  }
  func.func @transform_4(%arg0: i32) -> (i32, i32) {
    %c0_i32 = arith.constant 0 : i32
    %c0_i32_0 = arith.constant 0 : i32
    %c0_i32_1 = arith.constant 0 : i32
    return %c0_i32, %c0_i32_0 : i32, i32
  }
  func.func @transform_5(%arg0: i32) -> (i32, i32) {
    %c0_i32 = arith.constant 0 : i32
    %c0_i32_0 = arith.constant 0 : i32
    %c0_i32_1 = arith.constant 0 : i32
    return %c0_i32, %c0_i32_0 : i32, i32
  }
  func.func @transform_6(%arg0: i32) -> (i32, i32) {
    %c0_i32 = arith.constant 0 : i32
    %c0_i32_0 = arith.constant 0 : i32
    return %arg0, %c0_i32 : i32, i32
  }
}

</mosaic_0001>

<bundles_post_ra>
// kernel: nonlinear_model_forward.1
= control target key start
LH: loop header
LB: loop body
LE: loop exit
PB: predicated region body
PF: predicated region fallthrough
CT: control target
= control target key end

     0   :  { %s704_s1 = inlined_call_operand.vmem [shape: f32[128,128], index: 1, kind: input, shape index: {}]   ;;  %s705_s0 = inlined_call_operand.vmem [shape: f32[16,128], index: 0, kind: input, shape index: {}]   ;;  %s706_s3 = inlined_call_operand.vmem [shape: f32[128,128], index: 3, kind: input, shape index: {}]   ;;  %s707_s5 = inlined_call_operand.vmem [shape: f32[128,128], index: 5, kind: input, shape index: {}]   ;;  %s708_s2 = inlined_call_operand.vmem [shape: f32[1,128], index: 2, kind: input, shape index: {}]   ;;  %s709_s4 = inlined_call_operand.vmem [shape: f32[1,128], index: 4, kind: input, shape index: {}]   ;;  %s710_s6 = inlined_call_operand.vmem [shape: f32[16,128], index: 6, kind: output, shape index: {}]  }
   0x1   :  { %v40_v0 = vld [vmem:[%s704_s1 + $0x78] sm:$0xff]  ;;  %v39_v1 = vld [vmem:[%s704_s1 + $0x70] sm:$0xff]  ;;  %v38_v2 = vld [vmem:[%s704_s1 + $0x68] sm:$0xff] }
   0x2   :  { %394 = vmatprep.subr.mxu0 %v40_v0  ;;  %v37_v3 = vld [vmem:[%s704_s1 + $0x60] sm:$0xff]  ;;  %v36_v5 = vld [vmem:[%s704_s1 + $0x58] sm:$0xff]  ;;  %v147_v7 = vld [vmem:[%s706_s3 + $0x70] sm:$0xff] }
   0x3   :  { %395 = vmatpush3.msra.mxu0 %v40_v0  ;;  %v23_v4 = vld [vmem:[%s705_s0] sm:$0xff]  ;;  %v148_v6 = vld [vmem:[%s706_s3 + $0x78] sm:$0xff]  ;;  %v35_v8 = vld [vmem:[%s704_s1 + $0x50] sm:$0xff] }
   0x4   :  { %396 = vmatprep.subr.mxu0 %v39_v1  ;;  %426 = vmatprep.mubr.f32.mxu0 %v23_v4  ;;  %v146_v9 = vld [vmem:[%s706_s3 + $0x68] sm:$0xff]  ;;  %v33_v11 = vld [vmem:[%s704_s1 + $0x40] sm:$0xff]  ;;  %v32_v12 = vld [vmem:[%s704_s1 + $0x38] sm:$0xff] }
   0x5   :  { %397 = vmatpush3.msra.mxu0 %v39_v1  ;;  %429 = vmatprep.subr.mxu1 %v148_v6  ;;  %v34_v10 = vld [vmem:[%s704_s1 + $0x48] sm:$0xff]  ;;  %v31_v13 = vld [vmem:[%s704_s1 + $0x30] sm:$0xff]  ;;  %v29_v15 = vld [vmem:[%s704_s1 + $0x20] sm:$0xff] }
   0x6   :  { %398 = vmatprep.subr.mxu0 %v38_v2  ;;  %430 = vmatpush3.msra.mxu1 %v148_v6  ;;  %v30_v14 = vld [vmem:[%s704_s1 + $0x28] sm:$0xff]  ;;  %v28_v16 = vld [vmem:[%s704_s1 + $0x18] sm:$0xff]  ;;  %v27_v17 = vld [vmem:[%s704_s1 + $0x10] sm:$0xff] }
   0x7   :  { %399 = vmatpush3.msra.mxu0 %v38_v2  ;;  %431 = vmatprep.subr.mxu1 %v147_v7  ;;  %v26_v18 = vld [vmem:[%s704_s1 + $0x8] sm:$0xff]  ;;  %v25_v19 = vld [vmem:[%s704_s1] sm:$0xff]  ;;  %v144_v22 = vld [vmem:[%s706_s3 + $0x58] sm:$0xff] }
   0x8   :  { %400 = vmatprep.subr.mxu0 %v37_v3  ;;  %432 = vmatpush3.msra.mxu1 %v147_v7  ;;  %v24_v20 = vld [vmem:[%s705_s0 + $0x8] sm:$0xff]  ;;  %v145_v21 = vld [vmem:[%s706_s3 + $0x60] sm:$0xff]  ;;  %v143_v23 = vld [vmem:[%s706_s3 + $0x50] sm:$0xff] }
   0x9   :  { %401 = vmatpush3.msra.mxu0 %v37_v3  ;;  %433 = vmatprep.subr.mxu1 %v146_v9  ;;  %v142_v24 = vld [vmem:[%s706_s3 + $0x48] sm:$0xff]  ;;  %v141_v25 = vld [vmem:[%s706_s3 + $0x40] sm:$0xff]  ;;  %v140_v26 = vld [vmem:[%s706_s3 + $0x38] sm:$0xff] }
   0xa   :  { %402 = vmatprep.subr.mxu0 %v36_v5  ;;  %434 = vmatpush3.msra.mxu1 %v146_v9  ;;  %v139_v27 = vld [vmem:[%s706_s3 + $0x30] sm:$0xff]  ;;  %v138_v28 = vld [vmem:[%s706_s3 + $0x28] sm:$0xff]  ;;  %v137_v29 = vld [vmem:[%s706_s3 + $0x20] sm:$0xff] }
   0xb   :  { %403 = vmatpush3.msra.mxu0 %v36_v5  ;;  %435 = vmatprep.subr.mxu1 %v145_v21  ;;  %v136_v30 = vld [vmem:[%s706_s3 + $0x18] sm:$0xff]  ;;  %v135_v31 = vld [vmem:[%s706_s3 + $0x10] sm:$0xff]  ;;  %v134_v32 = vld [vmem:[%s706_s3 + $0x8] sm:$0xff] }
   0xc   :  { %404 = vmatprep.subr.mxu0 %v35_v8  ;;  %436 = vmatpush3.msra.mxu1 %v145_v21  ;;  %v133_v33 = vld [vmem:[%s706_s3] sm:$0xff]  ;;  %v256_v34 = vld [vmem:[%s707_s5 + $0x78] sm:$0xff]  ;;  %v255_v35 = vld [vmem:[%s707_s5 + $0x70] sm:$0xff] }
   0xd   :  { %405 = vmatpush3.msra.mxu0 %v35_v8  ;;  %437 = vmatprep.subr.mxu1 %v144_v22  ;;  %v254_v36 = vld [vmem:[%s707_s5 + $0x68] sm:$0xff]  ;;  %v338_v37 = vld [vmem:[%s708_s2] ss:$0 sm:$0xff]  ;;  %v252_v53 = vld [vmem:[%s707_s5 + $0x58] sm:$0xff] }
   0xe   :  { %406 = vmatprep.subr.mxu0 %v34_v10  ;;  %438 = vmatpush3.msra.mxu1 %v144_v22  ;;  %v253_v52 = vld [vmem:[%s707_s5 + $0x60] sm:$0xff]  ;;  %v251_v54 = vld [vmem:[%s707_s5 + $0x50] sm:$0xff]  ;;  %v250_v55 = vld [vmem:[%s707_s5 + $0x48] sm:$0xff] }
   0xf   :  { %407 = vmatpush3.msra.mxu0 %v34_v10  ;;  %439 = vmatprep.subr.mxu1 %v143_v23  ;;  %v249_v56 = vld [vmem:[%s707_s5 + $0x40] sm:$0xff]  ;;  %v248_v57 = vld [vmem:[%s707_s5 + $0x38] sm:$0xff]  ;;  %v247_v58 = vld [vmem:[%s707_s5 + $0x30] sm:$0xff] }
  0x10   :  { %408 = vmatprep.subr.mxu0 %v33_v11  ;;  %440 = vmatpush3.msra.mxu1 %v143_v23  ;;  %v246_v59 = vld [vmem:[%s707_s5 + $0x28] sm:$0xff]  ;;  %v245_v60 = vld [vmem:[%s707_s5 + $0x20] sm:$0xff]  ;;  %v244_v61 = vld [vmem:[%s707_s5 + $0x18] sm:$0xff] }
  0x11   :  { %409 = vmatpush3.msra.mxu0 %v33_v11  ;;  %441 = vmatprep.subr.mxu1 %v142_v24  ;;  %v243_v62 = vld [vmem:[%s707_s5 + $0x10] sm:$0xff]  ;;  %v242_v63 = vld [vmem:[%s707_s5 + $0x8] sm:$0xff]  ;;  %v241_v0 = vld [vmem:[%s707_s5] sm:$0xff] }
  0x12   :  { %410 = vmatprep.subr.mxu0 %v32_v12  ;;  %442 = vmatpush3.msra.mxu1 %v142_v24  ;;  %v339_v1 = vld [vmem:[%s709_s4] ss:$0 sm:$0xff] }
  0x13   :  { %411 = vmatpush3.msra.mxu0 %v32_v12  ;;  %443 = vmatprep.subr.mxu1 %v141_v25 }
  0x14   :  { %412 = vmatprep.subr.mxu0 %v31_v13  ;;  %444 = vmatpush3.msra.mxu1 %v141_v25 }
  0x15   :  { %413 = vmatpush3.msra.mxu0 %v31_v13  ;;  %445 = vmatprep.subr.mxu1 %v140_v26 }
  0x16   :  { %414 = vmatprep.subr.mxu0 %v30_v14  ;;  %446 = vmatpush3.msra.mxu1 %v140_v26 }
  0x17   :  { %415 = vmatpush3.msra.mxu0 %v30_v14  ;;  %447 = vmatprep.subr.mxu1 %v139_v27 }
  0x18   :  { %416 = vmatprep.subr.mxu0 %v29_v15  ;;  %448 = vmatpush3.msra.mxu1 %v139_v27 }
  0x19   :  { %417 = vmatpush3.msra.mxu0 %v29_v15  ;;  %449 = vmatprep.subr.mxu1 %v138_v28 }
  0x1a   :  { %418 = vmatprep.subr.mxu0 %v28_v16  ;;  %450 = vmatpush3.msra.mxu1 %v138_v28 }
  0x1b   :  { %419 = vmatpush3.msra.mxu0 %v28_v16  ;;  %451 = vmatprep.subr.mxu1 %v137_v29 }
  0x1c   :  { %420 = vmatprep.subr.mxu0 %v27_v17  ;;  %452 = vmatpush3.msra.mxu1 %v137_v29 }
  0x1d   :  { %421 = vmatpush3.msra.mxu0 %v27_v17  ;;  %453 = vmatprep.subr.mxu1 %v136_v30 }
  0x1e   :  { %422 = vmatprep.subr.mxu0 %v26_v18  ;;  %454 = vmatpush3.msra.mxu1 %v136_v30 }
  0x1f   :  { %423 = vmatpush3.msra.mxu0 %v26_v18  ;;  %455 = vmatprep.subr.mxu1 %v135_v31 }
  0x20   :  { %424 = vmatprep.subr.mxu0 %v25_v19  ;;  %456 = vmatpush3.msra.mxu1 %v135_v31 }
  0x21   :  { %425 = vmatpush3.msra.mxu0 %v25_v19  ;;  %457 = vmatprep.subr.mxu1 %v134_v32 }
  0x22   :  { %427 = vmatmul.mubr.f32.vlgmr.msra.gmra.mxu0 %v24_v20  ;;  %458 = vmatpush3.msra.mxu1 %v134_v32 }
  0x23   :  { %459 = vmatprep.subr.mxu1 %v133_v33  ;;  %464 = vmatprep.subr.mxu0 %v256_v34 }
  0x24   :  { %460 = vmatpush3.msra.mxu1 %v133_v33  ;;  %465 = vmatpush3.msra.mxu0 %v256_v34 }
  0x25   :  { %466 = vmatprep.subr.mxu0 %v255_v35 }
  0x26   :  { %467 = vmatpush3.msra.mxu0 %v255_v35 }
  0x27   :  { %468 = vmatprep.subr.mxu0 %v254_v36 }
  0x28   :  { %469 = vmatpush3.msra.mxu0 %v254_v36 }
  0x29   :  { %470 = vmatprep.subr.mxu0 %v253_v52 }
  0x2a   :  { %471 = vmatpush3.msra.mxu0 %v253_v52 }
  0x2b   :  { %472 = vmatprep.subr.mxu0 %v252_v53 }
  0x2c   :  { %473 = vmatpush3.msra.mxu0 %v252_v53 }
  0x2d   :  { %474 = vmatprep.subr.mxu0 %v251_v54 }
  0x2e   :  { %475 = vmatpush3.msra.mxu0 %v251_v54 }
  0x2f   :  { %476 = vmatprep.subr.mxu0 %v250_v55 }
  0x30   :  { %477 = vmatpush3.msra.mxu0 %v250_v55 }
  0x31   :  { %478 = vmatprep.subr.mxu0 %v249_v56 }
  0x32   :  { %479 = vmatpush3.msra.mxu0 %v249_v56 }
  0x33   :  { %480 = vmatprep.subr.mxu0 %v248_v57 }
  0x34   :  { %481 = vmatpush3.msra.mxu0 %v248_v57 }
  0x35   :  { %482 = vmatprep.subr.mxu0 %v247_v58 }
  0x36   :  { %483 = vmatpush3.msra.mxu0 %v247_v58 }
  0x37   :  { %484 = vmatprep.subr.mxu0 %v246_v59 }
  0x38   :  { %485 = vmatpush3.msra.mxu0 %v246_v59 }
  0x39   :  { %486 = vmatprep.subr.mxu0 %v245_v60 }
  0x3a   :  { %487 = vmatpush3.msra.mxu0 %v245_v60 }
  0x3b   :  { %488 = vmatprep.subr.mxu0 %v244_v61 }
  0x3c   :  { %489 = vmatpush3.msra.mxu0 %v244_v61 }
  0x3d   :  { %490 = vmatprep.subr.mxu0 %v243_v62 }
  0x3e   :  { %491 = vmatpush3.msra.mxu0 %v243_v62 }
  0x3f   :  { %492 = vmatprep.subr.mxu0 %v242_v63 }
  0x40   :  { %493 = vmatpush3.msra.mxu0 %v242_v63 }
  0x41   :  { %494 = vmatprep.subr.mxu0 %v241_v0 }
  0x42   :  { %495 = vmatpush3.msra.mxu0 %v241_v0 }
  0xe2   :  { %v428_v38 = vpop.f32.mrf.mxu0 }
  0xe3   :  { %v120_v39 = vadd.f32 %v428_v38, %v338_v37 }
  0xe4   :  { %v114_v40 = vpop.f32.mrf.mxu0 }
  0xe5   :  { %v126_v41 = vmul.f32 0.70710677, %v120_v39  ;;  %v115_v42 = vadd.f32 %v338_v37, %v114_v40  ;;  %v124_v49 = vmul.f32 0.5, %v120_v39 }
  0xe7   :  { %499 = verf.f32 %v126_v41  ;;  %v125_v43 = vmul.f32 0.70710677, %v115_v42  ;;  %v123_v47 = vmul.f32 0.5, %v115_v42 }
  0xe9   :  { %501 = verf.f32 %v125_v43 }
  0xf4   :  { %v500_v44 = vpop.eup %499 }
  0xf5   :  { %v130_v46 = vadd.f32 1.0, %v500_v44 }
  0xf6   :  { %v502_v45 = vpop.eup %501 }
  0xf7   :  { %v129_v48 = vadd.f32 1.0, %v502_v45  ;;  %v132_v51 = vmul.f32 %v130_v46, %v124_v49 }
  0xf9   :  { %v131_v50 = vmul.f32 %v129_v48, %v123_v47 }
  0xfb   :  { %461 = vmatprep.mubr.f32.mxu1 %v131_v50 }
  0xfc   :  { %462 = vmatmul.mubr.f32.vlgmr.msra.gmra.mxu1 %v132_v51 }
 0x1bc   :  { %v463_v2 = vpop.f32.mrf.mxu1 }
 0x1bd   :  { %v228_v3 = vadd.f32 %v463_v2, %v339_v1 }
 0x1be   :  { %v222_v4 = vpop.f32.mrf.mxu1 }
 0x1bf   :  { %v234_v5 = vmul.f32 0.70710677, %v228_v3  ;;  %v223_v6 = vadd.f32 %v339_v1, %v222_v4  ;;  %v232_v13 = vmul.f32 0.5, %v228_v3 }
 0x1c1   :  { %503 = verf.f32 %v234_v5  ;;  %v233_v7 = vmul.f32 0.70710677, %v223_v6  ;;  %v231_v11 = vmul.f32 0.5, %v223_v6 }
 0x1c3   :  { %505 = verf.f32 %v233_v7 }
 0x1ce   :  { %v504_v8 = vpop.eup %503 }
 0x1cf   :  { %v238_v10 = vadd.f32 1.0, %v504_v8 }
 0x1d0   :  { %v506_v9 = vpop.eup %505 }
 0x1d1   :  { %v237_v12 = vadd.f32 1.0, %v506_v9  ;;  %v240_v15 = vmul.f32 %v238_v10, %v232_v13 }
 0x1d3   :  { %v239_v14 = vmul.f32 %v237_v12, %v231_v11 }
 0x1d5   :  { %496 = vmatprep.mubr.f32.mxu0 %v239_v14 }
 0x1d6   :  { %497 = vmatmul.mubr.f32.vlgmr.msra.gmra.mxu0 %v240_v15 }
 0x296   :  { %v498_v16 = vpop.f32.mrf.mxu0 }
 0x297   :  { %333 = vst [vmem:[%s710_s6 + $0x8] sm:$0xff] %v498_v16 }
 0x298   :  { %v323_v17 = vpop.f32.mrf.mxu0 }
 0x299   :  { %332 = vst [vmem:[%s710_s6] sm:$0xff] %v323_v17 }

</bundles_post_ra>
